<compile_context>
chip_gen: v7x
topology: tpu7x:2x2x1
jax: 0.10.0
libtpu: 0.0.40
codegen_flags: <defaults>
</compile_context>

<pallas_src>
import functools

import jax
import jax.numpy as jnp
from jax.experimental import pallas as pl
from jax.experimental.pallas import tpu as pltpu


def _round_up(x, m):
    return ((x + m - 1) // m) * m


def _embed_mean_kernel(tok_ref, emb_hi_ref, emb_lo_ref, out_ref, acc_ref, *,
                       v_tile, k_chunk, r_sub, seq_len, inv_len):
    """One grid step: per-(row-subblock, 128-vocab) one-hot counts fed to two bf16 MXU matmuls.

    tok_ref    : VMEM (rows, L) int32      token ids for this row block
    emb_hi_ref : VMEM (v_tile, E) bf16     high bf16 half of the table slice
    emb_lo_ref : VMEM (v_tile, E) bf16     low  bf16 half (emb ~= hi + lo)
    out_ref    : VMEM (rows, E)            resident across the vocab (reduction) axis
    acc_ref    : VMEM (rows, E) f32        accumulator scratch
    """
    vj = pl.program_id(1)

    @pl.when(vj == 0)
    def _init():
        acc_ref[...] = jnp.zeros_like(acc_ref)

    rows = acc_ref.shape[0]
    v_base = vj * v_tile
    n_k = v_tile // k_chunk

    # Static loop over row sub-blocks keeps each counts chunk small enough to stay vreg-resident.
    for r0 in range(0, rows, r_sub):
        r_len = min(r_sub, rows - r0)
        tok_sub = tok_ref[r0:r0 + r_len, :]                                  # (r_len, L) int32
        lane_iota = jax.lax.broadcasted_iota(jnp.int32, (r_len, k_chunk), 1)

        def do_chunk(k_start, t_rel):
            # counts[r, v] = #{l : tok[r, l] == v_base + k_start + v}; int32 accum, one bf16 cast.
            counts = (t_rel[:, 0:1] == lane_iota).astype(jnp.int32)
            for l in range(1, seq_len):
                counts = counts + (t_rel[:, l:l + 1] == lane_iota).astype(jnp.int32)
            counts_bf = counts.astype(jnp.bfloat16)                          # exact: counts <= L
            hi = emb_hi_ref[pl.ds(k_start, k_chunk), :]
            lo = emb_lo_ref[pl.ds(k_start, k_chunk), :]
            part = jnp.dot(counts_bf, hi, preferred_element_type=jnp.float32)
            part = part + jnp.dot(counts_bf, lo, preferred_element_type=jnp.float32)
            acc_ref[r0:r0 + r_len, :] += part

        if n_k <= 8:
            # Small vocab tile: full static unroll (static table slices, no dynamic indexing).
            for c in range(n_k):
                do_chunk(c * k_chunk, tok_sub - (v_base + c * k_chunk))
        else:
            def body(c, _):
                k_start = pl.multiple_of(c * k_chunk, k_chunk)
                do_chunk(k_start, tok_sub - (v_base + k_start))
                return 0
            jax.lax.fori_loop(0, n_k, body, 0, unroll=False)

    @pl.when(vj == pl.num_programs(1) - 1)
    def _finalize():
        out_ref[...] = (acc_ref[...] * jnp.float32(inv_len)).astype(out_ref.dtype)


def vanilla_sequence_encoder(x, emb_table, *,
                             table_vmem_budget=20 << 20,
                             rows_vmem_budget=16 << 20):
    """x: (U, B, L) integer tokens, emb_table: (V, E) float -> (U, B, E)."""
    U, B, L = x.shape
    V, E = emb_table.shape
    N = U * B

    E_pad = _round_up(E, 128)
    k_chunk = 128
    bf16_bytes = jnp.dtype(jnp.bfloat16).itemsize
    out_itemsize = jnp.dtype(emb_table.dtype).itemsize

    # ---- vocab tiling: keep the whole (hi+lo, double-buffered) table VMEM-resident if it fits ----
    V_128 = _round_up(V, k_chunk)
    resident_bytes = 2 * 2 * V_128 * E_pad * bf16_bytes
    if resident_bytes <= table_vmem_budget:
        v_tile = V_128                      # single vocab block -> table DMA'd from HBM once
    else:
        v_tile = (table_vmem_budget // (2 * 2 * E_pad * bf16_bytes)) // k_chunk * k_chunk
        v_tile = min(max(v_tile, k_chunk), V_128)
    V_pad = _round_up(V, v_tile)
    table_resident = (V_pad == v_tile)

    # ---- row tiling ----
    N_8 = _round_up(max(N, 1), 8)
    r_sub = 256
    target_rows = 512 if table_resident else 1024   # amortize table re-streaming when not resident
    per_row_bytes = E_pad * (4 + 2 * out_itemsize) + 2 * _round_up(L, 128) * 4
    max_rows = max(8, (rows_vmem_budget // per_row_bytes) // 8 * 8)
    rows_per_block = min(target_rows, max_rows, N_8)
    if N_8 >= 512 and rows_per_block >= N_8:
        # Keep >= 2 row blocks so the "parallel" axis can shard across v7x's 2 TensorCores.
        rows_per_block = _round_up(pl.cdiv(N_8, 2), 8)
    if rows_per_block > r_sub:
        rows_per_block = max(r_sub, (rows_per_block // r_sub) * r_sub)
    r_sub_eff = min(r_sub, rows_per_block)
    N_pad = _round_up(N_8, rows_per_block)

    grid = (N_pad // rows_per_block, V_pad // v_tile)   # rows parallel, vocab reduction last
    num_row_blocks = grid[0]

    # ---- prepare inputs ----
    tok = x.reshape(N, L).astype(jnp.int32)
    if N_pad != N:
        tok = jnp.pad(tok, ((0, N_pad - N), (0, 0)))    # padded rows are sliced away below

    emb_f32 = emb_table.astype(jnp.float32)
    if V_pad != V or E_pad != E:
        emb_f32 = jnp.pad(emb_f32, ((0, V_pad - V), (0, E_pad - E)))
    emb_hi = emb_f32.astype(jnp.bfloat16)               # emb == hi + lo up to ~2^-18 relative
    emb_lo = (emb_f32 - emb_hi.astype(jnp.float32)).astype(jnp.bfloat16)

    kernel = functools.partial(
        _embed_mean_kernel,
        v_tile=v_tile, k_chunk=k_chunk, r_sub=r_sub_eff,
        seq_len=L, inv_len=1.0 / L)

    # ---- VMEM budget / scoped limit (conservative: <= 48 MiB fits every generation) ----
    tok_block_bytes = rows_per_block * _round_up(L, 128) * 4
    table_block_bytes = 2 * v_tile * E_pad * bf16_bytes
    out_block_bytes = rows_per_block * E_pad * out_itemsize
    acc_bytes = rows_per_block * E_pad * 4
    footprint = (2 * tok_block_bytes + 2 * table_block_bytes
                 + 2 * out_block_bytes + acc_bytes)
    vmem_limit = int(min(48 << 20, max(footprint + (4 << 20), 16 << 20)))

    # Table is streamed once if resident, else once per row block.
    table_streams = 1 if table_resident else num_row_blocks
    cost = pl.CostEstimate(
        flops=2 * (2 * N_pad * V_pad * E_pad) + 2 * N_pad * V_pad * L,
        transcendentals=0,
        bytes_accessed=(N_pad * L * 4
                        + table_streams * 2 * V_pad * E_pad * bf16_bytes
                        + N_pad * E_pad * out_itemsize),
    )

    out = pl.pallas_call(
        kernel,
        out_shape=jax.ShapeDtypeStruct((N_pad, E_pad), emb_table.dtype),
        grid_spec=pltpu.PrefetchScalarGridSpec(
            num_scalar_prefetch=0,
            grid=grid,
            in_specs=[
                pl.BlockSpec((rows_per_block, L), lambda i, j: (i, 0)),   # tokens: per row block
                pl.BlockSpec((v_tile, E_pad), lambda i, j: (j, 0)),       # table hi half
                pl.BlockSpec((v_tile, E_pad), lambda i, j: (j, 0)),       # table lo half
            ],
            out_specs=pl.BlockSpec((rows_per_block, E_pad), lambda i, j: (i, 0)),
            scratch_shapes=[pltpu.VMEM((rows_per_block, E_pad), jnp.float32)],
        ),
        compiler_params=pltpu.CompilerParams(
            dimension_semantics=("parallel", "arbitrary"),
            vmem_limit_bytes=vmem_limit,
        ),
        cost_estimate=cost,
    )(tok, emb_hi, emb_lo)

    return out[:N, :E].reshape(U, B, E)


def make_embedding_table(key, vocab_size, embedding_dim, pad_idx):
    """Deterministic nn.Embedding-style init: N(0,1) rows, padding_idx row zeroed."""
    w = jax.random.normal(key, (vocab_size, embedding_dim), dtype=jnp.float32)
    w = w.at[pad_idx].set(0.0)
    return w


if __name__ == "__main__":
    key = jax.random.PRNGKey(0)
    k_emb, k_tok, k_emb2, k_tok2 = jax.random.split(key, 4)

    # Small shapes consistent with the module's forward (U x B x L tokens).
    U, B, L = 8, 2, 8
    vocab_size, embedding_dim, pad_idx = 32, 128, 0

    emb_table = make_embedding_table(k_emb, vocab_size, embedding_dim, pad_idx)
    x = jax.random.randint(k_tok, (U, B, L), minval=0, maxval=vocab_size, dtype=jnp.int32)

    out = jax.block_until_ready(vanilla_sequence_encoder(x, emb_table))
    ref = jnp.take(emb_table, x, axis=0).mean(axis=2)
    assert out.shape == (U, B, embedding_dim)
    assert jnp.allclose(out, ref, rtol=1e-4, atol=1e-4), "mismatch vs reference (aligned shapes)"

    # Second check: N, V, E not multiples of the tile sizes (exercises padding/slicing paths).
    U2, B2, L2 = 5, 3, 7
    V2, E2, pad2 = 300, 96, 0
    emb2 = make_embedding_table(k_emb2, V2, E2, pad2)
    x2 = jax.random.randint(k_tok2, (U2, B2, L2), minval=0, maxval=V2, dtype=jnp.int32)

    out2 = jax.block_until_ready(vanilla_sequence_encoder(x2, emb2))
    ref2 = jnp.take(emb2, x2, axis=0).mean(axis=2)
    assert out2.shape == (U2, B2, E2)
    assert jnp.allclose(out2, ref2, rtol=1e-4, atol=1e-4), "mismatch vs reference (ragged shapes)"

    print("KERNEL_OK")
</pallas_src>

<mosaic_0001>
module attributes {stable_mosaic.version = 11 : i64} {
  func.func @_embed_mean_kernel(%arg0: i32, %arg1: i32, %arg2: memref<16x8xi32, #tpu.memory_space<vmem>>, %arg3: memref<128x128xbf16, #tpu.memory_space<vmem>>, %arg4: memref<128x128xbf16, #tpu.memory_space<vmem>>, %arg5: memref<16x128xf32, #tpu.memory_space<vmem>>, %arg6: memref<16x128xf32, #tpu.memory_space<vmem>>) attributes {dimension_semantics = [#tpu.dimension_semantics<parallel>, #tpu.dimension_semantics<arbitrary>], iteration_bounds = array<i64: 1, 1>, scalar_prefetch = 0 : i64, scratch_operands = 1 : i64, tpu.core_type = #tpu.core_type<tc>, window_params = [{transform_indices = @transform_0, window_bounds = array<i64: 16, 8>}, {transform_indices = @transform_1, window_bounds = array<i64: 128, 128>}, {transform_indices = @transform_2, window_bounds = array<i64: 128, 128>}, {transform_indices = @transform_3, window_bounds = array<i64: 16, 128>}]} {
    %c0_i32 = arith.constant 0 : i32
    %0 = arith.cmpi eq, %arg1, %c0_i32 : i32
    %1 = arith.extui %0 : i1 to i32
    %c0_i32_0 = arith.constant 0 : i32
    %2 = arith.cmpi ne, %1, %c0_i32_0 : i32
    scf.if %2 {
      %cst_14 = arith.constant 0.000000e+00 : f32
      %60 = vector.broadcast %cst_14 : f32 to vector<16x128xf32>
      %c0_15 = arith.constant 0 : index
      %c0_16 = arith.constant 0 : index
      %61 = vector.load %arg6[%c0_15, %c0_16] : memref<16x128xf32, #tpu.memory_space<vmem>>, vector<16x128xf32>
      tpu.vector_store %arg6[%c0_15, %c0_16], %60 {strides = array<i32>} : memref<16x128xf32, #tpu.memory_space<vmem>>, vector<16x128xf32>,
    } else {
    }
    %c128_i32 = arith.constant 128 : i32
    %3 = arith.muli %arg1, %c128_i32 : i32
    %c0 = arith.constant 0 : index
    %c0_1 = arith.constant 0 : index
    %4 = vector.load %arg2[%c0, %c0_1] : memref<16x8xi32, #tpu.memory_space<vmem>>, vector<16x8xi32>
    %5 = tpu.iota {dimensions = array<i32: 1>} : vector<16x128xi32>
    %c0_i32_2 = arith.constant 0 : i32
    %6 = arith.addi %3, %c0_i32_2 : i32
    %7 = vector.broadcast %6 : i32 to vector<16x8xi32>
    %8 = arith.subi %4, %7 : vector<16x8xi32>
    %9 = vector.extract_strided_slice %8 {offsets = [0, 0], sizes = [16, 1], strides = [1, 1]} : vector<16x8xi32> to vector<16x1xi32>
    %10 = vector.broadcast %9 : vector<16x1xi32> to vector<16x128xi32>
    %11 = arith.cmpi eq, %10, %5 : vector<16x128xi32>
    %12 = arith.extui %11 : vector<16x128xi1> to vector<16x128xi32>
    %13 = vector.extract_strided_slice %8 {offsets = [0, 1], sizes = [16, 1], strides = [1, 1]} : vector<16x8xi32> to vector<16x1xi32>
    %14 = vector.broadcast %13 : vector<16x1xi32> to vector<16x128xi32>
    %15 = arith.cmpi eq, %14, %5 : vector<16x128xi32>
    %16 = arith.extui %15 : vector<16x128xi1> to vector<16x128xi32>
    %17 = arith.addi %12, %16 : vector<16x128xi32>
    %18 = vector.extract_strided_slice %8 {offsets = [0, 2], sizes = [16, 1], strides = [1, 1]} : vector<16x8xi32> to vector<16x1xi32>
    %19 = vector.broadcast %18 : vector<16x1xi32> to vector<16x128xi32>
    %20 = arith.cmpi eq, %19, %5 : vector<16x128xi32>
    %21 = arith.extui %20 : vector<16x128xi1> to vector<16x128xi32>
    %22 = arith.addi %17, %21 : vector<16x128xi32>
    %23 = vector.extract_strided_slice %8 {offsets = [0, 3], sizes = [16, 1], strides = [1, 1]} : vector<16x8xi32> to vector<16x1xi32>
    %24 = vector.broadcast %23 : vector<16x1xi32> to vector<16x128xi32>
    %25 = arith.cmpi eq, %24, %5 : vector<16x128xi32>
    %26 = arith.extui %25 : vector<16x128xi1> to vector<16x128xi32>
    %27 = arith.addi %22, %26 : vector<16x128xi32>
    %28 = vector.extract_strided_slice %8 {offsets = [0, 4], sizes = [16, 1], strides = [1, 1]} : vector<16x8xi32> to vector<16x1xi32>
    %29 = vector.broadcast %28 : vector<16x1xi32> to vector<16x128xi32>
    %30 = arith.cmpi eq, %29, %5 : vector<16x128xi32>
    %31 = arith.extui %30 : vector<16x128xi1> to vector<16x128xi32>
    %32 = arith.addi %27, %31 : vector<16x128xi32>
    %33 = vector.extract_strided_slice %8 {offsets = [0, 5], sizes = [16, 1], strides = [1, 1]} : vector<16x8xi32> to vector<16x1xi32>
    %34 = vector.broadcast %33 : vector<16x1xi32> to vector<16x128xi32>
    %35 = arith.cmpi eq, %34, %5 : vector<16x128xi32>
    %36 = arith.extui %35 : vector<16x128xi1> to vector<16x128xi32>
    %37 = arith.addi %32, %36 : vector<16x128xi32>
    %38 = vector.extract_strided_slice %8 {offsets = [0, 6], sizes = [16, 1], strides = [1, 1]} : vector<16x8xi32> to vector<16x1xi32>
    %39 = vector.broadcast %38 : vector<16x1xi32> to vector<16x128xi32>
    %40 = arith.cmpi eq, %39, %5 : vector<16x128xi32>
    %41 = arith.extui %40 : vector<16x128xi1> to vector<16x128xi32>
    %42 = arith.addi %37, %41 : vector<16x128xi32>
    %43 = vector.extract_strided_slice %8 {offsets = [0, 7], sizes = [16, 1], strides = [1, 1]} : vector<16x8xi32> to vector<16x1xi32>
    %44 = vector.broadcast %43 : vector<16x1xi32> to vector<16x128xi32>
    %45 = arith.cmpi eq, %44, %5 : vector<16x128xi32>
    %46 = arith.extui %45 : vector<16x128xi1> to vector<16x128xi32>
    %47 = arith.addi %42, %46 : vector<16x128xi32>
    %48 = arith.sitofp %47 : vector<16x128xi32> to vector<16x128xbf16>
    %c0_3 = arith.constant 0 : index
    %c0_4 = arith.constant 0 : index
    %49 = vector.load %arg3[%c0_3, %c0_4] : memref<128x128xbf16, #tpu.memory_space<vmem>>, vector<128x128xbf16>
    %c0_5 = arith.constant 0 : index
    %c0_6 = arith.constant 0 : index
    %50 = vector.load %arg4[%c0_5, %c0_6] : memref<128x128xbf16, #tpu.memory_space<vmem>>, vector<128x128xbf16>
    %cst = arith.constant dense<0.000000e+00> : vector<16x128xf32>
    %51 = tpu.matmul %48, %49, %cst {dimension_numbers = #tpu.dot_dimension_numbers<[1], [0], [0], [1], [0, 0, 1, 1], [], []>} : vector<16x128xbf16>, vector<128x128xbf16>, vector<16x128xf32> -> vector<16x128xf32>
    %cst_7 = arith.constant dense<0.000000e+00> : vector<16x128xf32>
    %52 = tpu.matmul %48, %50, %cst_7 {dimension_numbers = #tpu.dot_dimension_numbers<[1], [0], [0], [1], [0, 0, 1, 1], [], []>} : vector<16x128xbf16>, vector<128x128xbf16>, vector<16x128xf32> -> vector<16x128xf32>
    %53 = arith.addf %51, %52 : vector<16x128xf32>
    %c0_8 = arith.constant 0 : index
    %c0_9 = arith.constant 0 : index
    %54 = vector.load %arg6[%c0_8, %c0_9] : memref<16x128xf32, #tpu.memory_space<vmem>>, vector<16x128xf32>
    %55 = arith.addf %54, %53 : vector<16x128xf32>
    %c0_10 = arith.constant 0 : index
    %c0_11 = arith.constant 0 : index
    %56 = vector.load %arg6[%c0_10, %c0_11] : memref<16x128xf32, #tpu.memory_space<vmem>>, vector<16x128xf32>
    tpu.vector_store %arg6[%c0_10, %c0_11], %55 {strides = array<i32>} : memref<16x128xf32, #tpu.memory_space<vmem>>, vector<16x128xf32>,
    %c0_i32_12 = arith.constant 0 : i32
    %57 = arith.cmpi eq, %arg1, %c0_i32_12 : i32
    %58 = arith.extui %57 : i1 to i32
    %c0_i32_13 = arith.constant 0 : i32
    %59 = arith.cmpi ne, %58, %c0_i32_13 : i32
    scf.if %59 {
      %c0_14 = arith.constant 0 : index
      %c0_15 = arith.constant 0 : index
      %60 = vector.load %arg6[%c0_14, %c0_15] : memref<16x128xf32, #tpu.memory_space<vmem>>, vector<16x128xf32>
      %cst_16 = arith.constant 1.250000e-01 : f32
      %61 = vector.broadcast %cst_16 : f32 to vector<16x128xf32>
      %62 = arith.mulf %60, %61 : vector<16x128xf32>
      %c0_17 = arith.constant 0 : index
      %c0_18 = arith.constant 0 : index
      %63 = vector.load %arg5[%c0_17, %c0_18] : memref<16x128xf32, #tpu.memory_space<vmem>>, vector<16x128xf32>
      tpu.vector_store %arg5[%c0_17, %c0_18], %62 {strides = array<i32>} : memref<16x128xf32, #tpu.memory_space<vmem>>, vector<16x128xf32>,
    } else {
    }
    return
  }
  func.func @transform_0(%arg0: i32, %arg1: i32) -> (i32, i32) {
    %c0_i32 = arith.constant 0 : i32
    %c0_i32_0 = arith.constant 0 : i32
    return %arg0, %c0_i32 : i32, i32
  }
  func.func @transform_1(%arg0: i32, %arg1: i32) -> (i32, i32) {
    %c0_i32 = arith.constant 0 : i32
    %c0_i32_0 = arith.constant 0 : i32
    return %arg1, %c0_i32 : i32, i32
  }
  func.func @transform_2(%arg0: i32, %arg1: i32) -> (i32, i32) {
    %c0_i32 = arith.constant 0 : i32
    %c0_i32_0 = arith.constant 0 : i32
    return %arg1, %c0_i32 : i32, i32
  }
  func.func @transform_3(%arg0: i32, %arg1: i32) -> (i32, i32) {
    %c0_i32 = arith.constant 0 : i32
    %c0_i32_0 = arith.constant 0 : i32
    return %arg0, %c0_i32 : i32, i32
  }
}

</mosaic_0001>

<bundles_post_ra>
// kernel: tpu_custom_call.1
= control target key start
LH: loop header
LB: loop body
LE: loop exit
PB: predicated region body
PF: predicated region fallthrough
CT: control target
= control target key end

     0   :  { %8 = vsyncpa [#allocation4], 0  ;;  %s726_s0 = inlined_call_operand.vmem [shape: s32[16,8], index: 0, kind: input, shape index: {}]   ;;  %s727_s1 = inlined_call_operand.hbm [shape: bf16[128,128], index: 1, kind: input, shape index: {}]   ;;  %s728_s2 = inlined_call_operand.hbm [shape: bf16[128,128], index: 2, kind: input, shape index: {}]   ;;  %s729_s3 = inlined_call_operand.hbm [shape: f32[16,128], index: 3, kind: output, shape index: {}]  }
   0x1   :  { %9 = vsyncpa [#allocation7], 0 }
   0x2   :  { %10 = vsyncpa [#allocation5], 0  ;;  %s592_s12 = smov [#allocation3]   ;;  %s520_s16 = scalar_lea.hbm %s727_s1, 1024 }
   0x3   :  { %s18_s13 = sshll.u32 %s592_s12, 4  ;;  %p521_p0 = scmp.ne.s32.totalorder %s727_s1, %s520_s16  ;;  %s19_s13 = int_to_ptr.vmem [resolvable:$true] %s18_s13 }
   0x4   :  { %p524_p1 = scmp.lt.u32.totalorder %s520_s16, %s727_s1 }
   0x6   :  { %p526_p2 = pnand %p524_p1, %p521_p0 }
   0x8   :  { %529 = shalt.err (!%p526_p2)
}
   0x9   :  { %s530_s21 = scalar_lea.vmem %s19_s13, 1024  ;;  %p535_p4 = scmp.lt.s32.totalorder %s19_s13, %s19_s13 }
   0xa   :  { %p531_p3 = scmp.ne.s32.totalorder %s19_s13, %s530_s21  ;;  %p536_p5 = scmp.lt.s32.totalorder %s530_s21, %s530_s21 }
   0xc   :  { %p537_p6 = por %p536_p5, %p535_p4 }
   0xe   :  { %p538_p7 = pnand %p537_p6, %p531_p3 }
  0x10   :  { %541 = shalt.err (!%p538_p7)
}
  0x11   :  { %s593_s22 = smov 64   ;;  %s594_s23 = smov 4  }
  0x12   :  { %24 = dma.hbm_to_vmem [thread:$0]  %s727_s1, 1024, %s19_s13, [#allocation4], %s593_s22, %s593_s22, %s594_s23  }
  0x13   :  { %s595_s26 = smov [#allocation6]   ;;  %s542_s30 = scalar_lea.hbm %s728_s2, 1024 }
  0x14   :  { %s30_s27 = sshll.u32 %s595_s26, 4  ;;  %p543_p8 = scmp.ne.s32.totalorder %s728_s2, %s542_s30  ;;  %s31_s27 = int_to_ptr.vmem [resolvable:$true] %s30_s27 }
  0x15   :  { %p546_p9 = scmp.lt.u32.totalorder %s542_s30, %s728_s2 }
  0x17   :  { %p548_p10 = pnand %p546_p9, %p543_p8 }
  0x19   :  { %551 = shalt.err (!%p548_p10)
}
  0x1a   :  { %s552_s8 = scalar_lea.vmem %s31_s27, 1024  ;;  %p557_p12 = scmp.lt.s32.totalorder %s31_s27, %s31_s27 }
  0x1b   :  { %p553_p11 = scmp.ne.s32.totalorder %s31_s27, %s552_s8  ;;  %p558_p13 = scmp.lt.s32.totalorder %s552_s8, %s552_s8 }
  0x1d   :  { %p559_p0 = por %p558_p13, %p557_p12 }
  0x1f   :  { %p560_p1 = pnand %p559_p0, %p553_p11 }
  0x21   :  { %563 = shalt.err (!%p560_p1)
}
  0x22   :  { %36 = dma.hbm_to_vmem [thread:$0]  %s728_s2, 1024, %s31_s27, [#allocation7], %s593_s22, %s593_s22, %s594_s23  }
  0x23   :  { %586 = dma.done.wait [#allocation4], 1024  }
  0x24   :  { %587 = vsyncadd [#allocation4], 4294966272 }
  0x25   :  { %588 = dma.done.wait [#allocation7], 1024  }
  0x26   :  { %589 = vsyncadd [#allocation7], 4294966272  ;;  %v596_v0 = vmov 1   ;;  %v597_v1 = vmov 0   ;;  %v657_v2 = vld [vmem:[%s726_s0] sm:$0xff]  ;;  %v662_v3 = vld [vmem:[%s726_s0 + $0x8] sm:$0xff]  ;;  %v53_v33 = vlaneseq }
  0x27   :  { %492 = vset.pattern.permute.xlu1 %v596_v0  ;;  %491 = vset.pattern.permute.xlu0 %v597_v1  ;;  %v598_v4 = vmov 2   ;;  %v599_v5 = vmov 3   ;;  %v600_v6 = vmov 0.0   ;;  %v504_v7 = vld [vmem:[#allocation6] sm:$0xff]   ;;  %v601_v9 = vmov 4   ;;  %v506_v11 = vld [vmem:[#allocation6 + $0x8] sm:$0xff]  }
  0x28   :  { %69 = vperm.xlu1 %492, %v657_v2   ;;  %59 = vperm.xlu0 %491, %v657_v2   ;;  %v505_v8 = vld [vmem:[#allocation3] sm:$0xff]   ;;  %v602_v10 = vmov 5   ;;  %v507_v12 = vld [vmem:[#allocation3 + $0x8] sm:$0xff]   ;;  %v603_v13 = vmov 6   ;;  %v508_v14 = vld [vmem:[#allocation6 + $0x10] sm:$0xff]   ;;  %v604_v18 = vmov 7  }
  0x29   :  { %432 = vmatprep.subr.bf16.mxu1 %v600_v6  ;;  %452 = vmatprep.subr.bf16.mxu0 %v600_v6  ;;  %v509_v15 = vld [vmem:[#allocation3 + $0x10] sm:$0xff]   ;;  %v510_v16 = vld [vmem:[#allocation6 + $0x18] sm:$0xff]   ;;  %v512_v19 = vld [vmem:[#allocation6 + $0x20] sm:$0xff]   ;;  %vm605_vm0 = vmmov 0   ;;  %v54_v34 = vand.u32 127, %v53_v33  ;;  %s606_s0 = smov [#allocation8]  }
  0x2a   :  { %433 = vmatpush3.bf16.msra.mxu1 %v504_v7  ;;  %453 = vmatpush3.bf16.msra.mxu0 %v505_v8  ;;  %v511_v17 = vld [vmem:[#allocation3 + $0x18] sm:$0xff]   ;;  %v513_v20 = vld [vmem:[#allocation3 + $0x20] sm:$0xff]   ;;  %v514_v21 = vld [vmem:[#allocation6 + $0x28] sm:$0xff]   ;;  %s385_s2 = sshll.u32 %s606_s0, 4  ;;  %s386_s2 = int_to_ptr.vmem [resolvable:$true] %s385_s2 }
  0x2b   :  { %434 = vmatprep.subr.bf16.mxu1 %v600_v6  ;;  %454 = vmatprep.subr.bf16.mxu0 %v600_v6  ;;  %v515_v22 = vld [vmem:[#allocation3 + $0x28] sm:$0xff]   ;;  %v516_v23 = vld [vmem:[#allocation6 + $0x30] sm:$0xff]   ;;  %v518_v25 = vld [vmem:[#allocation6 + $0x38] sm:$0xff]   ;;  %s564_s14 = scalar_lea.vmem %s386_s2, 256  ;;  %p569_p3 = scmp.lt.s32.totalorder %s386_s2, %s386_s2 }
  0x2c   :  { %72 = vperm.xlu1 %492, %v662_v3   ;;  %62 = vperm.xlu0 %491, %v662_v3   ;;  %v517_v24 = vld [vmem:[#allocation3 + $0x30] sm:$0xff]   ;;  %v519_v26 = vld [vmem:[#allocation3 + $0x38] sm:$0xff]   ;;  %p565_p2 = scmp.ne.s32.totalorder %s386_s2, %s564_s14  ;;  %p570_p4 = scmp.lt.s32.totalorder %s564_s14, %s564_s14 }
  0x2d   :  { %448 = vmatprep.mubr.msk.bf16.mxu1 %vm605_vm0, %v600_v6  ;;  %468 = vmatprep.mubr.msk.bf16.mxu0 %vm605_vm0, %v600_v6 }
  0x2e   :  { %435 = vmatpush3.bf16.msra.mxu1 %v506_v11  ;;  %455 = vmatpush3.bf16.msra.mxu0 %v507_v12  ;;  %p571_p5 = por %p570_p4, %p569_p3 }
  0x2f   :  { %436 = vmatprep.subr.bf16.mxu1 %v600_v6  ;;  %456 = vmatprep.subr.bf16.mxu0 %v600_v6 }
  0x30   :  { %494 = vset.pattern.permute.xlu1 %v598_v4  ;;  %493 = vset.pattern.permute.xlu0 %v598_v4  ;;  %p572_p6 = pnand %p571_p5, %p565_p2 }
  0x31   :  { %84 = vperm.xlu1 %494, %v662_v3   ;;  %81 = vperm.xlu0 %493, %v657_v2  }
  0x32   :  { %437 = vmatpush3.bf16.msra.mxu1 %v508_v14  ;;  %457 = vmatpush3.bf16.msra.mxu0 %v509_v15 }
  0x33   :  { %438 = vmatprep.subr.bf16.mxu1 %v600_v6  ;;  %458 = vmatprep.subr.bf16.mxu0 %v600_v6 }
  0x35   :  { %495 = vset.pattern.permute.xlu1 %v599_v5  ;;  %496 = vset.pattern.permute.xlu0 %v599_v5 }
  0x36   :  { %93 = vperm.xlu1 %495, %v657_v2   ;;  %96 = vperm.xlu0 %496, %v662_v3  }
  0x37   :  { %439 = vmatpush3.bf16.msra.mxu1 %v510_v16  ;;  %459 = vmatpush3.bf16.msra.mxu0 %v511_v17 }
  0x38   :  { %440 = vmatprep.subr.bf16.mxu1 %v600_v6  ;;  %460 = vmatprep.subr.bf16.mxu0 %v600_v6 }
  0x3a   :  { %497 = vset.pattern.permute.xlu1 %v601_v9  ;;  %498 = vset.pattern.permute.xlu0 %v602_v10 }
  0x3b   :  { %105 = vperm.xlu1 %497, %v657_v2   ;;  %117 = vperm.xlu0 %498, %v657_v2  }
  0x3c   :  { %441 = vmatpush3.bf16.msra.mxu1 %v512_v19  ;;  %461 = vmatpush3.bf16.msra.mxu0 %v513_v20 }
  0x3d   :  { %442 = vmatprep.subr.bf16.mxu1 %v600_v6  ;;  %462 = vmatprep.subr.bf16.mxu0 %v600_v6 }
  0x3f   :  { %108 = vperm.xlu1 %497, %v662_v3   ;;  %501 = vset.pattern.permute.xlu0 %v603_v13 }
  0x40   :  { %132 = vperm.xlu0 %501, %v662_v3   ;;  %443 = vmatpush3.bf16.msra.mxu1 %v514_v21 }
  0x41   :  { %463 = vmatpush3.bf16.msra.mxu0 %v515_v22  ;;  %444 = vmatprep.subr.bf16.mxu1 %v600_v6 }
  0x42   :  { %464 = vmatprep.subr.bf16.mxu0 %v600_v6 }
  0x43   :  { %499 = vset.pattern.permute.xlu1 %v602_v10 }
  0x44   :  { %120 = vperm.xlu1 %499, %v662_v3   ;;  %503 = vset.pattern.permute.xlu0 %v604_v18 }
  0x45   :  { %445 = vmatpush3.bf16.msra.mxu1 %v516_v23  ;;  %465 = vmatpush3.bf16.msra.mxu0 %v517_v24 }
  0x46   :  { %446 = vmatprep.subr.bf16.mxu1 %v600_v6  ;;  %466 = vmatprep.subr.bf16.mxu0 %v600_v6 }
  0x48   :  { %500 = vset.pattern.permute.xlu1 %v603_v13 }
  0x49   :  { %129 = vperm.xlu1 %500, %v657_v2   ;;  %447 = vmatpush3.bf16.msra.mxu1 %v518_v25 }
  0x4a   :  { %467 = vmatpush3.bf16.msra.mxu0 %v519_v26 }
  0x4d   :  { %502 = vset.pattern.permute.xlu1 %v604_v18 }
  0x4e   :  { %141 = vperm.xlu1 %502, %v657_v2  }
  0x52   :  { %144 = vperm.xlu1 %502, %v662_v3  }
  0xa7   :  { %v70_v27 = vpop.permute.xlu1 %69  ;;  %v60_v29 = vpop.permute.xlu0 %59 }
  0xa8   :  { %vm74_vm1 = vcmp.eq.s32.totalorder %v70_v27, %v54_v34  ;;  %vm64_vm2 = vcmp.eq.s32.totalorder %v60_v29, %v54_v34 }
  0xa9   :  { %v76_v38 = vsel %vm74_vm1, 1, %v597_v1  ;;  %v66_v39 = vsel %vm64_vm2, 1, %v597_v1 }
  0xaa   :  { %v78_v45 = vadd.s32 %v76_v38, %v66_v39 }
  0xab   :  { %v73_v28 = vpop.permute.xlu1 %72  ;;  %v63_v31 = vpop.permute.xlu0 %62 }
  0xac   :  { %vm75_vm3 = vcmp.eq.s32.totalorder %v73_v28, %v54_v34  ;;  %vm65_vm4 = vcmp.eq.s32.totalorder %v63_v31, %v54_v34 }
  0xad   :  { %v77_v41 = vsel %vm75_vm3, 1, %v597_v1  ;;  %v67_v42 = vsel %vm65_vm4, 1, %v597_v1 }
  0xae   :  { %v79_v49 = vadd.s32 %v77_v41, %v67_v42 }
  0xb0   :  { %v85_v30 = vpop.permute.xlu1 %84  ;;  %v82_v36 = vpop.permute.xlu0 %81 }
  0xb1   :  { %vm86_vm5 = vcmp.eq.s32.totalorder %v82_v36, %v54_v34  ;;  %vm87_vm6 = vcmp.eq.s32.totalorder %v85_v30, %v54_v34 }
  0xb2   :  { %v88_v43 = vsel %vm86_vm5, 1, %v597_v1  ;;  %v89_v46 = vsel %vm87_vm6, 1, %v597_v1 }
  0xb3   :  { %v90_v50 = vadd.s32 %v88_v43, %v78_v45  ;;  %v91_v53 = vadd.s32 %v89_v46, %v79_v49 }
  0xb5   :  { %v94_v32 = vpop.permute.xlu1 %93  ;;  %v97_v40 = vpop.permute.xlu0 %96 }
  0xb6   :  { %vm98_vm7 = vcmp.eq.s32.totalorder %v94_v32, %v54_v34  ;;  %vm99_vm8 = vcmp.eq.s32.totalorder %v97_v40, %v54_v34 }
  0xb7   :  { %v100_v47 = vsel %vm98_vm7, 1, %v597_v1  ;;  %v101_v51 = vsel %vm99_vm8, 1, %v597_v1 }
  0xb8   :  { %v102_v54 = vadd.s32 %v100_v47, %v90_v50  ;;  %v103_v58 = vadd.s32 %v101_v51, %v91_v53 }
  0xba   :  { %v106_v35 = vpop.permute.xlu1 %105  ;;  %v118_v48 = vpop.permute.xlu0 %117 }
  0xbb   :  { %vm110_vm9 = vcmp.eq.s32.totalorder %v106_v35, %v54_v34  ;;  %vm122_vm11 = vcmp.eq.s32.totalorder %v118_v48, %v54_v34 }
  0xbc   :  { %v112_v52 = vsel %vm110_vm9, 1, %v597_v1  ;;  %v124_v60 = vsel %vm122_vm11, 1, %v597_v1 }
  0xbd   :  { %v114_v59 = vadd.s32 %v112_v52, %v102_v54 }
  0xbe   :  { %v109_v37 = vpop.permute.xlu1 %108 }
  0xbf   :  { %vm111_vm10 = vcmp.eq.s32.totalorder %v109_v37, %v54_v34  ;;  %v133_v57 = vpop.permute.xlu0 %132  ;;  %v126_v2 = vadd.s32 %v124_v60, %v114_v59 }
  0xc0   :  { %v113_v56 = vsel %vm111_vm10, 1, %v597_v1  ;;  %vm135_vm14 = vcmp.eq.s32.totalorder %v133_v57, %v54_v34 }
  0xc1   :  { %v115_v62 = vadd.s32 %v113_v56, %v103_v58  ;;  %v137_v4 = vsel %vm135_vm14, 1, %v597_v1 }
  0xc3   :  { %v121_v44 = vpop.permute.xlu1 %120 }
  0xc4   :  { %vm123_vm12 = vcmp.eq.s32.totalorder %v121_v44, %v54_v34 }
  0xc5   :  { %v125_v61 = vsel %vm123_vm12, 1, %v597_v1 }
  0xc6   :  { %v127_v3 = vadd.s32 %v125_v61, %v115_v62 }
  0xc8   :  { %v130_v55 = vpop.permute.xlu1 %129  ;;  %v139_v8 = vadd.s32 %v137_v4, %v127_v3 }
  0xc9   :  { %vm134_vm13 = vcmp.eq.s32.totalorder %v130_v55, %v54_v34 }
  0xca   :  { %v136_v63 = vsel %vm134_vm13, 1, %v597_v1 }
  0xcb   :  { %v138_v6 = vadd.s32 %v136_v63, %v126_v2 }
  0xcd   :  { %v142_v0 = vpop.permute.xlu1 %141 }
  0xce   :  { %vm146_vm15 = vcmp.eq.s32.totalorder %v142_v0, %v54_v34 }
  0xcf   :  { %v148_v5 = vsel %vm146_vm15, 1, %v597_v1 }
  0xd0   :  { %v150_v9 = vadd.s32 %v148_v5, %v138_v6 }
  0xd1   :  { %v145_v7 = vpop.permute.xlu1 %144 }
  0xd2   :  { %vm147_vm0 = vcmp.eq.s32.totalorder %v145_v7, %v54_v34  ;;  %v152_v12 = vcvt.s32.f32 %v150_v9 }
  0xd3   :  { %v149_v10 = vsel %vm147_vm0, 1, %v597_v1 }
  0xd4   :  { %v151_v11 = vadd.s32 %v149_v10, %v139_v8 }
  0xd6   :  { %v153_v13 = vcvt.s32.f32 %v151_v11 }
  0xd8   :  { %v154_v14 = vpack.c.bf16 %v153_v13, %v152_v12 }
  0xda   :  { %449 = vmatmul.mubr.bf16.vlgmr.msra.gmra.mrb[0].mxu1 %v154_v14  ;;  %469 = vmatmul.mubr.bf16.vlgmr.msra.gmra.mrb[0].mxu0 %v154_v14 }
 0x1ad   :  { %v269_v15 = vpop.f32.mrb[0].mxu1  ;;  %v358_v16 = vpop.f32.mrb[0].mxu0 }
 0x1ae   :  { %v359_v17 = vadd.f32 %v358_v16, %v269_v15  ;;  %v450_v18 = vpop.f32.mrb[1].mxu1  ;;  %v470_v19 = vpop.f32.mrb[1].mxu0 }
 0x1af   :  { %v272_v20 = vpop.f32.mrb[2].mxu1  ;;  %v361_v21 = vpop.f32.mrb[2].mxu0 }
 0x1b0   :  { %v376_v22 = vmul.f32 0.125, %v359_v17  ;;  %v362_v23 = vadd.f32 %v361_v21, %v272_v20  ;;  %v451_v24 = vpop.f32.mrb[3].mxu1  ;;  %v471_v25 = vpop.f32.mrb[3].mxu0 }
 0x1b2   :  { %378 = vst [vmem:[#allocation8] sm:$0xff] %v376_v22  ;;  %v377_v1 = vmul.f32 0.125, %v362_v23 }
 0x1b4   :  { %379 = vst [vmem:[#allocation8 + $0x8] sm:$0xff] %v377_v1 }
 0x1b5   :  { %575 = shalt.err (!%p572_p6)
}
 0x1b6   :  { %s576_s17 = scalar_lea.hbm %s729_s3, 256 }
 0x1b7   :  { %p577_p7 = scmp.ne.s32.totalorder %s729_s3, %s576_s17  ;;  %p580_p8 = scmp.lt.u32.totalorder %s576_s17, %s729_s3 }
 0x1b9   :  { %p582_p9 = pnand %p580_p8, %p577_p7 }
 0x1bb   :  { %585 = shalt.err (!%p582_p9)
}
 0x1bc   :  { %s607_s22 = smov 128   ;;  %s608_s23 = smov 8  }
 0x1bd   :  { %391 = dma.vmem_to_hbm [thread:$0]  %s386_s2, 256, %s729_s3, [#allocation5], %s607_s22, %s607_s22, %s608_s23  }
 0x1be   :  { %590 = dma.done.wait [#allocation5], 256  }
 0x1bf   :  { %591 = vsyncadd [#allocation5], 4294967040 }
 0x1c0   :  { %395 = vsyncpa [#allocation4], 1 }
 0x1c1   :  { %396 = vsyncpa [#allocation7], 1 }
 0x1c2   :  { %397 = vsyncpa [#allocation5], 1 }

</bundles_post_ra>
